<compile_context>
chip_gen: v7x
topology: tpu7x:2x2x1
jax: 0.10.0
libtpu: 0.0.40
codegen_flags: <defaults>
</compile_context>

<pallas_src>
import functools

import jax
import jax.numpy as jnp
from jax import lax
from jax.experimental import pallas as pl
from jax.experimental.pallas import tpu as pltpu


def _lightconv_kernel(x_ref, w_ref, b_ref, o_ref, *, K, padding):
    """One (channel-tile, batch) block per grid step.

    x_ref : (1, TC, T)  input block (any float dtype)
    w_ref : (TC, K)     per-channel taps (head weight expanded), f32
    b_ref : (TC, 1)     per-channel bias, f32
    o_ref : (1, TC, T)  output block (same dtype as input)
    """
    TC = o_ref.shape[1]
    T = o_ref.shape[2]

    x = x_ref[0].astype(jnp.float32)                     # load the tile once
    w = w_ref[...].astype(jnp.float32)                   # (TC, K)
    lane = lax.broadcasted_iota(jnp.int32, (TC, T), 1)   # hoisted out of the loop

    # out[c, t] = sum_k w[c, k] * x[c, t + k - padding]  (zeros outside [0, T))
    # Each tap is a circular roll (XLU) + lane mask (VPU select) + MAC (VPU).
    acc = None
    for k in range(K):                                   # K is a Python constant
        s = k - padding                                  # static time shift
        if abs(s) >= T:
            continue                                     # tap lies entirely in the halo
        if s == 0:
            tap = x
        else:
            shifted = pltpu.roll(x, (-s) % T, 1)         # shifted[t] = x[t + s] (circular)
            if s > 0:
                tap = jnp.where(lane < T - s, shifted, 0.0)
            else:
                tap = jnp.where(lane >= -s, shifted, 0.0)
        term = w[:, k:k + 1] * tap
        acc = term if acc is None else acc + term

    if acc is None:                                      # degenerate config: all taps masked
        acc = jnp.zeros((TC, T), jnp.float32)

    o_ref[0] = (acc + b_ref[...]).astype(o_ref.dtype)


def _vmem_budget():
    """Per-generation block-size target and scoped-VMEM limit."""
    try:
        cap = pltpu.get_tpu_info().vmem_capacity_bytes
    except Exception:
        cap = 64 << 20                       # assume the smallest (v7x) if query fails
    if cap >= (100 << 20):                   # v5e / v6e: 128 MiB physical VMEM
        return cap, 12 << 20, 96 << 20
    return cap, 5 << 20, 40 << 20            # v7x: 64 MiB physical VMEM


def _pick_channel_tile(C, T, itemsize, B, *, target_bytes, min_steps=8):
    """Channel tile: multiple of the packed-sublane granularity (8 f32 /
    16 bf16 / 32 int8), sized under target_bytes per block, preferring exact
    divisors of C, and capped so the grid has >= min_steps for pipelining."""
    gran = max(8, 32 // max(1, itemsize))
    if C <= gran:
        return C
    row_bytes = max(1, T * itemsize)
    max_by_bytes = max(gran, (target_bytes // row_bytes) // gran * gran)
    tiles_wanted = -(-min_steps // max(1, B))            # channel tiles per batch (best effort)
    max_by_steps = max(gran, (C // max(1, tiles_wanted)) // gran * gran)
    cap = max(gran, min(max_by_bytes, max_by_steps, (C // gran) * gran))
    for tc in range(cap, gran - 1, -gran):               # prefer clean divisors of C
        if C % tc == 0:
            return tc
    return cap                                            # ragged tail handled by Pallas masking


def lightweight_conv1d(x, weight, bias, *, num_heads, padding, weight_softmax):
    """JAX/Pallas equivalent of LightweightConv1d.forward (inference).

    x      : (B, C, T) float32 or bfloat16
    weight : (H, 1, K)
    bias   : (C,) or None
    """
    B, C, T = x.shape
    H, _, K = weight.shape
    assert num_heads == H
    assert C % H == 0
    T_out = T + 2 * padding - K + 1
    assert T_out == T, "module's output.view(B, C, T) requires length-preserving padding"

    w = weight[:, 0, :].astype(jnp.float32)                    # (H, K)
    if weight_softmax:
        w = jax.nn.softmax(w, axis=-1)
    # TODO(synk): weight_dropout (FairseqDropout) is identity at inference; not modeled.

    # channel c of the BxCxT input uses head (c % H) after input.view(-1, H, T)
    head_of_channel = jnp.arange(C) % H                        # (C,)
    w_full = w[head_of_channel]                                # (C, K), f32

    b_full = bias if bias is not None else jnp.zeros((C,), jnp.float32)
    b_full = b_full.astype(jnp.float32).reshape(C, 1)          # (C, 1)

    itemsize = x.dtype.itemsize
    vmem_cap, target_block, vmem_limit = _vmem_budget()
    TC = _pick_channel_tile(C, T, itemsize, B, target_bytes=target_block)
    n_ct = pl.cdiv(C, TC)

    # Scoped VMEM: 2x double-buffered input + output blocks + tiny weight/bias.
    block_bytes = TC * T * itemsize
    vmem_needed = 4 * block_bytes + 4 * TC * (K + 1) * 4 + (2 << 20)
    vmem_limit = int(min(max(vmem_limit, vmem_needed), vmem_cap * 9 // 10))

    kernel = functools.partial(_lightconv_kernel, K=K, padding=padding)

    # Memory-bound cost hint for XLA's scheduler.
    flops = 2 * K * B * C * T
    bytes_accessed = (2 * B * C * T * itemsize            # read x + write out
                      + C * K * 4 + C * 4)                # weights + bias

    # TODO(synk): for very short / non-128-multiple T, fold channels into the lane
    # axis on the wrapper side to keep output stores lane-dense (matters most on v5e).
    # TODO(synk): add a time-tile grid axis with a (K-1) halo for very long T so a
    # single (TC, T) block cannot exceed the VMEM budget.
    out = pl.pallas_call(
        kernel,
        out_shape=jax.ShapeDtypeStruct((B, C, T), x.dtype),
        grid_spec=pltpu.PrefetchScalarGridSpec(
            num_scalar_prefetch=0,
            grid=(n_ct, B),                         # batch innermost -> w/b blocks not re-DMA'd
            in_specs=[
                pl.BlockSpec((1, TC, T), lambda c, b: (b, c, 0)),
                pl.BlockSpec((TC, K), lambda c, b: (c, 0)),
                pl.BlockSpec((TC, 1), lambda c, b: (c, 0)),
            ],
            out_specs=pl.BlockSpec((1, TC, T), lambda c, b: (b, c, 0)),
        ),
        compiler_params=pltpu.CompilerParams(
            dimension_semantics=("parallel", "parallel"),
            vmem_limit_bytes=vmem_limit,
        ),
        cost_estimate=pl.CostEstimate(
            flops=flops, transcendentals=0, bytes_accessed=bytes_accessed),
    )(x, w_full, b_full)
    return out


def _reference(x, weight, bias, *, num_heads, padding, weight_softmax):
    """Pure-JAX reference mirroring the PyTorch forward."""
    B, C, T = x.shape
    H, _, K = weight.shape
    w = weight[:, 0, :]
    if weight_softmax:
        w = jax.nn.softmax(w, axis=-1)
    w_full = w[jnp.arange(C) % H]                              # (C, K)
    x_pad = jnp.pad(x.astype(jnp.float32), ((0, 0), (0, 0), (padding, padding)))
    out = jnp.zeros((B, C, T), jnp.float32)
    for k in range(K):
        out = out + w_full[None, :, k:k + 1] * x_pad[:, :, k:k + T]
    if bias is not None:
        out = out + bias.reshape(1, C, 1)
    return out


if __name__ == "__main__":
    # Module config: input_size=C, kernel_size=3, padding=1, num_heads=4,
    # weight_softmax=True, bias=True, weight_dropout=0.0 (inference).
    B, C, T = 2, 16, 128      # T=128 keeps output stores lane-dense
    H, K, PAD = 4, 3, 1

    key = jax.random.PRNGKey(0)
    kx, kw = jax.random.split(key)

    x = jax.random.normal(kx, (B, C, T), dtype=jnp.float32)

    # Deterministic xavier-uniform-style init for (H, 1, K) weight; zero bias.
    bound = (6.0 / (K + 1)) ** 0.5
    weight = jax.random.uniform(kw, (H, 1, K), jnp.float32, -bound, bound)
    bias = jnp.zeros((C,), jnp.float32)

    # f32 path
    out = lightweight_conv1d(
        x, weight, bias, num_heads=H, padding=PAD, weight_softmax=True)
    out = jax.block_until_ready(out)
    ref = _reference(x, weight, bias, num_heads=H, padding=PAD, weight_softmax=True)
    assert out.shape == (B, C, T)
    assert jnp.allclose(out, ref, atol=1e-5, rtol=1e-5)

    # bf16 I/O path (halves HBM bytes; f32 accumulation inside the kernel)
    x_bf16 = x.astype(jnp.bfloat16)
    out_bf = lightweight_conv1d(
        x_bf16, weight, bias, num_heads=H, padding=PAD, weight_softmax=True)
    out_bf = jax.block_until_ready(out_bf)
    ref_bf = _reference(x_bf16.astype(jnp.float32), weight, bias,
                        num_heads=H, padding=PAD, weight_softmax=True)
    assert out_bf.dtype == jnp.bfloat16
    assert jnp.allclose(out_bf.astype(jnp.float32), ref_bf, atol=5e-2, rtol=5e-2)

    print("KERNEL_OK")
</pallas_src>

<mosaic_0001>
module attributes {stable_mosaic.version = 11 : i64} {
  func.func @_lightconv_kernel(%arg0: i32, %arg1: i32, %arg2: memref<1x8x128xf32, #tpu.memory_space<vmem>>, %arg3: memref<8x3xf32, #tpu.memory_space<vmem>>, %arg4: memref<8x1xf32, #tpu.memory_space<vmem>>, %arg5: memref<1x8x128xf32, #tpu.memory_space<vmem>>) attributes {dimension_semantics = [#tpu.dimension_semantics<parallel>, #tpu.dimension_semantics<parallel>], iteration_bounds = array<i64: 2, 2>, scalar_prefetch = 0 : i64, scratch_operands = 0 : i64, tpu.core_type = #tpu.core_type<tc>, window_params = [{transform_indices = @transform_0, window_bounds = array<i64: 1, 8, 128>}, {transform_indices = @transform_1, window_bounds = array<i64: 8, 3>}, {transform_indices = @transform_2, window_bounds = array<i64: 8, 1>}, {transform_indices = @transform_3, window_bounds = array<i64: 1, 8, 128>}]} {
    %c0 = arith.constant 0 : index
    %c0_0 = arith.constant 0 : index
    %c0_1 = arith.constant 0 : index
    %0 = vector.load %arg2[%c0, %c0_0, %c0_1] : memref<1x8x128xf32, #tpu.memory_space<vmem>>, vector<1x8x128xf32>
    %1 = vector.shape_cast %0 : vector<1x8x128xf32> to vector<8x128xf32>
    %c0_2 = arith.constant 0 : index
    %c0_3 = arith.constant 0 : index
    %2 = vector.load %arg3[%c0_2, %c0_3] : memref<8x3xf32, #tpu.memory_space<vmem>>, vector<8x3xf32>
    %3 = tpu.iota {dimensions = array<i32: 1>} : vector<8x128xi32>
    %c1_i32 = arith.constant 1 : i32
    %4 = tpu.dynamic_rotate %1 by %c1_i32 dim 1 : vector<8x128xf32>, i32 -> vector<8x128xf32>
    %c1_i32_4 = arith.constant 1 : i32
    %5 = vector.broadcast %c1_i32_4 : i32 to vector<8x128xi32>
    %6 = arith.cmpi sge, %3, %5 : vector<8x128xi32>
    %cst = arith.constant 0.000000e+00 : f32
    %7 = vector.broadcast %cst : f32 to vector<8x128xf32>
    %8 = arith.select %6, %4, %7 : vector<8x128xi1>, vector<8x128xf32>
    %9 = vector.extract_strided_slice %2 {offsets = [0, 0], sizes = [8, 1], strides = [1, 1]} : vector<8x3xf32> to vector<8x1xf32>
    %10 = vector.broadcast %9 : vector<8x1xf32> to vector<8x128xf32>
    %11 = arith.mulf %10, %8 : vector<8x128xf32>
    %12 = vector.extract_strided_slice %2 {offsets = [0, 1], sizes = [8, 1], strides = [1, 1]} : vector<8x3xf32> to vector<8x1xf32>
    %13 = vector.broadcast %12 : vector<8x1xf32> to vector<8x128xf32>
    %14 = arith.mulf %13, %1 : vector<8x128xf32>
    %15 = arith.addf %11, %14 : vector<8x128xf32>
    %c127_i32 = arith.constant 127 : i32
    %16 = tpu.dynamic_rotate %1 by %c127_i32 dim 1 : vector<8x128xf32>, i32 -> vector<8x128xf32>
    %c127_i32_5 = arith.constant 127 : i32
    %17 = vector.broadcast %c127_i32_5 : i32 to vector<8x128xi32>
    %18 = arith.cmpi slt, %3, %17 : vector<8x128xi32>
    %cst_6 = arith.constant 0.000000e+00 : f32
    %19 = vector.broadcast %cst_6 : f32 to vector<8x128xf32>
    %20 = arith.select %18, %16, %19 : vector<8x128xi1>, vector<8x128xf32>
    %21 = vector.extract_strided_slice %2 {offsets = [0, 2], sizes = [8, 1], strides = [1, 1]} : vector<8x3xf32> to vector<8x1xf32>
    %22 = vector.broadcast %21 : vector<8x1xf32> to vector<8x128xf32>
    %23 = arith.mulf %22, %20 : vector<8x128xf32>
    %24 = arith.addf %15, %23 : vector<8x128xf32>
    %c0_7 = arith.constant 0 : index
    %c0_8 = arith.constant 0 : index
    %25 = vector.load %arg4[%c0_7, %c0_8] : memref<8x1xf32, #tpu.memory_space<vmem>>, vector<8x1xf32>
    %26 = vector.broadcast %25 : vector<8x1xf32> to vector<8x128xf32>
    %27 = arith.addf %24, %26 : vector<8x128xf32>
    %c0_9 = arith.constant 0 : index
    %c0_10 = arith.constant 0 : index
    %c0_11 = arith.constant 0 : index
    %28 = vector.load %arg5[%c0_9, %c0_10, %c0_11] : memref<1x8x128xf32, #tpu.memory_space<vmem>>, vector<1x8x128xf32>
    %29 = vector.shape_cast %28 : vector<1x8x128xf32> to vector<8x128xf32>
    %30 = vector.shape_cast %27 : vector<8x128xf32> to vector<1x8x128xf32>
    tpu.vector_store %arg5[%c0_9, %c0_10, %c0_11], %30 {strides = array<i32>} : memref<1x8x128xf32, #tpu.memory_space<vmem>>, vector<1x8x128xf32>,
    return
  }
  func.func @transform_0(%arg0: i32, %arg1: i32) -> (i32, i32, i32) {
    %c0_i32 = arith.constant 0 : i32
    %c0_i32_0 = arith.constant 0 : i32
    return %arg1, %arg0, %c0_i32 : i32, i32, i32
  }
  func.func @transform_1(%arg0: i32, %arg1: i32) -> (i32, i32) {
    %c0_i32 = arith.constant 0 : i32
    %c0_i32_0 = arith.constant 0 : i32
    return %arg0, %c0_i32 : i32, i32
  }
  func.func @transform_2(%arg0: i32, %arg1: i32) -> (i32, i32) {
    %c0_i32 = arith.constant 0 : i32
    %c0_i32_0 = arith.constant 0 : i32
    return %arg0, %c0_i32 : i32, i32
  }
  func.func @transform_3(%arg0: i32, %arg1: i32) -> (i32, i32, i32) {
    %c0_i32 = arith.constant 0 : i32
    %c0_i32_0 = arith.constant 0 : i32
    return %arg1, %arg0, %c0_i32 : i32, i32, i32
  }
}

</mosaic_0001>

<bundles_post_ra>
// kernel: tpu_custom_call.1
= control target key start
LH: loop header
LB: loop body
LE: loop exit
PB: predicated region body
PF: predicated region fallthrough
CT: control target
= control target key end

     0   :  { %8 = vsyncpa [#allocation3], 0  ;;  %s745_s0 = inlined_call_operand.vmem [shape: f32[2,16,128], index: 0, kind: input, shape index: {}]   ;;  %s746_s1 = inlined_call_operand.vmem [shape: f32[16,3], index: 1, kind: input, shape index: {}]   ;;  %s747_s2 = inlined_call_operand.vmem [shape: f32[16,1], index: 2, kind: input, shape index: {}]   ;;  %s748_s3 = inlined_call_operand.hbm [shape: f32[2,16,128], index: 3, kind: output, shape index: {}]  }
   0x1   :  { %10 = vsyncpa [#allocation3 + $0x1], 0  ;;  %s602_s12 = smov 0   ;;  %s604_s13 = smov 0  }
   0x2   :  { %s606_s14 = smov 0   ;;  %s608_s15 = smov 0  }
   0x3   :  { %s610_s16 = smov 0   ;;  %s612_s17 = smov 0  }
   0x4   :  { %s614_s18 = smov 0   ;;  %s616_s19 = smov 0  }
   0x5 LB: > { %s384_s20 = sadd.s32 4294967295, %s574_s19   ;;  %s385_s21 = sadd.s32 4294967294, %s574_s19   ;;  %s574_s19 = sphi %s616_s19, %s16_s19   ;;  %s570_s18 = sphi %s614_s18, %s760_s18   ;;  %s566_s17 = sphi %s612_s17, %s759_s17   ;;  %s562_s16 = sphi %s610_s16, %s758_s16   ;;  %s558_s15 = sphi %s608_s15, %s757_s15   ;;  %s554_s14 = sphi %s606_s14, %s756_s14   ;;  %s550_s13 = sphi %s604_s13, %s755_s13   ;;  %s546_s12 = sphi %s602_s12, %s754_s12  }
   0x6   : > { %s25_s22 = sadd.s32 1, %s566_s17  ;;  %s28_s23 = sadd.s32 1, %s570_s18 }
   0x7   : > { %p26_p0 = scmp.ge.s32.totalorder %s25_s22, 2  ;;  %p127_p1 = scmp.ne.s32.totalorder %s554_s14, %s550_s13 }
   0x8   : > { %p128_p2 = scmp.eq.s32.totalorder %s384_s20, 3  ;;  %p133_p5 = scmp.ne.s32.totalorder %s550_s13, %s546_s12 }
   0x9   : > { %s762_s22 = smov (%p26_p0, %s25_s22), 0  ;;  %s764_s23 = smov (!%p26_p0, %s28_s23), %s570_s18 }
   0xa   : > { %s112_s24 = ssub.s32 %s566_s17, %s762_s22  ;;  %p653_p3 = por %p128_p2, %p127_p1 }
   0xb   : > { %p30_p4 = scmp.ge.s32.totalorder %s764_s23, 2  ;;  %p134_p6 = scmp.eq.s32.totalorder %s385_s21, 3 }
   0xc   : > { %p388_p7 = scmp.ge.s32.totalorder %s574_s19, 1  ;;  %p177_p9 = scmp.lt.s32.totalorder %s574_s19, 5 }
   0xd   : > { %s766_s23 = smov (%p30_p4, %s764_s23), 0  ;;  %p662_p8 = por %p134_p6, %p133_p5 }
   0xe   : > { %751 = sst [smem:[#allocation5_spill]] %s766_s23  ;;  %s113_s27 = ssub.s32 %s570_s18, %s766_s23 }
   0xf   : > { %s117_s28 = sadd.s32 1, %s554_s14  ;;  %s114_s29 = sor.u32 %s113_s27, %s112_s24 }
  0x10   : > { %p178_p10 = pnand %p388_p7, %p177_p9  ;;  %p115_p11 = scmp.eq.s32.totalorder %s114_s29, 0 }
  0x11   : > { %p214_p12 = scmp.lt.s32.totalorder (!%p178_p10), %s562_s16, 1  ;;  %p212_p13 = scmp.lt.s32.totalorder (!%p178_p10), %s558_s15, 1  ;;  %v576_v0 = vmov (!%p178_p10), 2   ;;  %v577_v1 = vmov (!%p178_p10), 0   ;;  %v578_v4 = vmov (!%p178_p10), 1   ;;  %v230_v6 = vlaneseq (!%p178_p10) }
  0x12   : > { %s671_s30 = scalar_select %p115_p11, %s554_s14, %s117_s28  }
  0x13   : > { %181 = sbr.rel (%p178_p10) target bundleno = 189 (0xbd), region = 32  ;;  %477 = vset.pattern.permute.xlu1 (!%p178_p10), %v576_v0  ;;  %475 = vset.pattern.permute.xlu0 (!%p178_p10), %v577_v1  ;;  %s579_s7 = smov (!%p178_p10), 1   ;;  %v231_v7 = vand.u32 (!%p178_p10), 127, %v230_v6 }
  0x14   : > { %s395_s8 = sshll.u32 (!%p178_p10), %s558_s15, 1 }
  0x15   : > { %vm234_vm0 = vcmp.ge.s32.totalorder (!%p178_p10), %v231_v7, 1  ;;  %vm250_vm1 = vcmp.lt.s32.totalorder (!%p178_p10), %v231_v7, 127 }
  0x1a   : > { %s215_s4 = scalar_select %p214_p12, %s562_s16, 1 }
  0x1b   : > { %s213_s5 = scalar_select %p212_p13, %s558_s15, 1 }
  0x1c   : > { %s392_s6 = sshll.u32 %s215_s4, 3 }
  0x1d   : > { %s223_s9 = scalar_lea.vmem %s746_s1, %s392_s6  ;;  %s390_s10 = sshll.u32 %s213_s5, 1 }
  0x1e   : > { %v229_v2 = vld [vmem:[%s223_s9] sm:$0xff]  ;;  %s217_s11 = sadd.s32 %s390_s10, %s215_s4  ;;  %s227_s23 = scalar_lea.vmem %s747_s2, %s392_s6 }
  0x1f   : > { %253 = vperm.xlu1 %477, %v229_v2   ;;  %238 = vperm.xlu0 %475, %v229_v2   ;;  %s391_s20 = sshll.u32 %s217_s11, 3  ;;  %v258_v5 = vld [vmem:[%s227_s23] sm:$0xff]  ;;  %s580_s4 = smov 127  }
  0x20   : > { %s219_s27 = scalar_lea.vmem %s745_s0, %s391_s20  ;;  %s209_s5 = sand.u32 1, %s550_s13  }
  0x21   : > { %v228_v3 = vld [vmem:[%s219_s27] sm:$0xff]  ;;  %s389_s6 = sshll.u32 %s209_s5, 3  ;;  %s278_s23 = sadd.s32 %s562_s16, %s395_s8 }
  0x22   : > { %s396_s9 = sshll.u32 %s278_s23, 7  ;;  %s211_s10 = scalar_lea.vmem [#allocation2], %s389_s6 }
  0x23   : > { %476 = vset.pattern.permute.xlu0 %v578_v4  ;;  %232 = vrot.lane.b32.xlu1 %v228_v3, %s579_s7  ;;  %s282_s11 = sshll.u32 %s211_s10, 4  ;;  %s692_s24 = scalar_lea.hbm %s748_s3, %s396_s9  ;;  %s694_s11 = int_to_ptr.vmem [resolvable:$true] %s282_s11 }
  0x24   : > { %243 = vperm.xlu0 %476, %v229_v2   ;;  %478 = vset.pattern.permute.xlu1 %v577_v1  ;;  %s267_s15 = scalar_lea.sflag [#allocation3], %s209_s5  ;;  %s480_s16 = scalar_lea.vmem %s694_s11, 128 }
  0x25   : > { %p481_p0 = scmp.ne.s32.totalorder %s694_s11, %s480_s16  ;;  %s581_s27 = smov [#allocation2]  }
  0x26   : > { %s484_s28 = sshll.u32 %s581_s27, 4  ;;  %s485_s28 = int_to_ptr.vmem [resolvable:$false] %s484_s28 }
  0x27   : > { %261 = vperm.xlu1 %478, %v258_v5   ;;  %p482_p1 = pnand %p481_p0, %p653_p3  ;;  %s486_s29 = scalar_lea.vmem %s485_s28, 256 }
  0x28   : > { %248 = vrot.lane.b32.xlu0 %v228_v3, %s580_s4  ;;  %p487_p4 = scmp.lt.s32.totalorder %s694_s11, %s485_s28  ;;  %p488_p5 = scmp.lt.s32.totalorder %s486_s29, %s480_s16 }
  0x29   : > { %479 = vset.pattern.permute.xlu0 %v577_v1  ;;  %p483_p2 = pneg %p482_p1 }
  0x2a   : > { %p489_p6 = por %p488_p5, %p487_p4 }
  0x2c   : > { %p490_p7 = pnand %p489_p6, %p483_p2 }
  0x9e   : > { %v254_v8 = vpop.permute.xlu1 %253  ;;  %v239_v9 = vpop.permute.xlu0 %238 }
  0xa2   : > { %v233_v10 = vpop.permute.xlu1 %232 }
  0xa3   : > { %v235_v11 = vsel %vm234_vm0, %v233_v10, 0.0  ;;  %v244_v12 = vpop.permute.xlu0 %243 }
  0xa4   : > { %v241_v13 = vmul.f32 %v239_v9, %v235_v11  ;;  %v246_v14 = vmul.f32 %v244_v12, %v228_v3 }
  0xa6   : > { %v247_v17 = vadd.f32 %v246_v14, %v241_v13  ;;  %v262_v19 = vpop.permute.xlu1 %261 }
  0xa7   : > { %v249_v15 = vpop.permute.xlu0 %248 }
  0xa8   : > { %v251_v16 = vsel %vm250_vm1, %v249_v15, 0.0 }
  0xa9   : > { %v256_v18 = vmul.f32 %v254_v8, %v251_v16 }
  0xab   : > { %v257_v20 = vadd.f32 %v256_v18, %v247_v17 }
  0xad   : > { %v264_v21 = vadd.f32 %v262_v19, %v257_v20 }
  0xaf   : > { %265 = vst [vmem:[%s211_s10] sm:$0xff] %v264_v21 }
  0xb0   : > { %493 = shalt.err (!%p490_p7)
}
  0xb1   : > { %s494_s7 = scalar_lea.hbm %s692_s24, 128  ;;  %s498_s6 = scalar_lea.hbm %s748_s3, 512 }
  0xb2   : > { %p495_p9 = scmp.ne.s32.totalorder %s692_s24, %s494_s7  ;;  %p499_p12 = scmp.lt.u32.totalorder %s692_s24, %s748_s3 }
  0xb3   : > { %p500_p13 = scmp.lt.u32.totalorder %s498_s6, %s494_s7  ;;  %p502_p1 = scmp.lt.u32.totalorder %s494_s7, %s692_s24 }
  0xb4   : > { %p496_p10 = pnand %p495_p9, %p653_p3 }
  0xb5   : > { %p501_p0 = por %p500_p13, %p499_p12 }
  0xb6   : > { %p497_p11 = pneg %p496_p10 }
  0xb7   : > { %p503_p2 = por %p502_p1, %p501_p0 }
  0xb9   : > { %p504_p4 = pnand %p503_p2, %p497_p11 }
  0xbb   : > { %507 = shalt.err (!%p504_p4)
}
  0xbc   : > { %399 = dma.vmem_to_hbm [thread:$0]  (%p653_p3), %s694_s11, 128, %s692_s24, %s267_s15  }
  0xbd PF: > { %p405_p5 = scmp.ge.s32.totalorder %s574_s19, 2  ;;  %s294_s9 = sand.u32 1, %s546_s12  }
  0xbe   : > { %s295_s10 = scalar_lea.sflag [#allocation3], %s294_s9 }
  0xbf   : > { %p402_p6 = pnand %p405_p5, %p662_p8 }
  0xc1   : > { %541 = dma.done.wait (!%p402_p6), %s295_s10, 128  }
  0xc2   : > { %543 = vsyncadd (!%p402_p6), %s295_s10, 4294967168  ;;  %s16_s19 = sadd.s32 1, %s574_s19   ;;  %s753_s25 = sld [smem:[#allocation5_spill]] }
  0xc3   : > { %p13_p7 = scmp.ge.s32.totalorder %s16_s19, 6   ;;  %s754_s12 = smov %s550_s13 }
  0xc4   : > { %s755_s13 = smov %s554_s14  ;;  %s756_s14 = smov %s671_s30 }
  0xc5   : > { %s757_s15 = smov %s566_s17  ;;  %s758_s16 = smov %s570_s18 }
  0xc6   : > { %s759_s17 = smov %s762_s22  ;;  %15 = sbr.rel (!%p13_p7) target bundleno = 5 (0x5), region = 73 }
  0xc8   : > { %s760_s18 = smov %s753_s25 }
  0xcd   :  { %300 = vsyncpa [#allocation3], 1 }
  0xce   :  { %302 = vsyncpa [#allocation3 + $0x1], 1 }

</bundles_post_ra>
